<compile_context>
chip_gen: v5e
topology: v5e:2x2
jax: 0.10.0
libtpu: 0.0.40
codegen_flags: <defaults>
</compile_context>

<pallas_src>
import functools
import math

import jax
import jax.numpy as jnp
import numpy as np
from jax.experimental import pallas as pl
from jax.experimental.pallas import tpu as pltpu

_VMEM_LIMIT_BYTES = 48 * 1024 * 1024   # explicit scoped-VMEM request (<= v7x 64 MiB physical)
_VMEM_BUDGET = 24 << 20                # target padded bytes for blocks + body temporaries


def _lane_pad(n):
    return ((n + 127) // 128) * 128


# ----------------------------------------------------------------------------
# Fast path: lane-packed "same" convolution (stride == 1, L_out == L)
# ----------------------------------------------------------------------------
def _block_packed_kernel(x_ref, p_ref, o_ref, *, L, K, padding, D, neg_slope):
    """x_ref : (TR, D*L)     packed rows; segment m = one (batch, channel) row
       p_ref : (K+1, 2*D*L)  per-lane masked, BN-folded taps (rows 0..K-1) + BN shift (row K)
       o_ref : (TR, 2*D*L)   segment 2m+j = branch j+1 of packed segment m (shuffle order)
    """
    x = x_ref[...].astype(jnp.float32)
    p = p_ref[...].astype(jnp.float32)
    tr = x.shape[0]
    w_out = 2 * D * L

    # Duplicate every L-wide segment into two adjacent segments (one per branch): one
    # accumulator then produces BOTH branches, already in channel_shuffle lane order.
    parts = []
    for m in range(D):
        seg = x[:, m * L:(m + 1) * L]
        parts.append(seg)
        parts.append(seg)
    xe = jnp.concatenate(parts, axis=1)                       # (TR, 2*D*L)

    # In-register halo. Cross-segment leakage of the shifted views is zeroed by the
    # wrapper-precomputed masked coefficients, so no per-tap masks are needed here.
    left, right = padding, K - 1 - padding
    pads = []
    if left > 0:
        pads.append(jnp.zeros((tr, left), jnp.float32))
    pads.append(xe)
    if right > 0:
        pads.append(jnp.zeros((tr, right), jnp.float32))
    xp = jnp.concatenate(pads, axis=1) if len(pads) > 1 else xe

    acc = jnp.zeros((tr, w_out), jnp.float32)
    for k in range(K):                                        # K shifted views, shared by both branches
        acc = acc + xp[:, k:k + w_out] * p[k:k + 1, :]
    acc = acc + p[K:K + 1, :]                                 # folded BN shift
    o_ref[...] = jnp.where(acc >= 0.0, acc, neg_slope * acc).astype(o_ref.dtype)


def _packed_coefficients(w1f, w2f, shift1, shift2, *, C, K, L, padding, D):
    """(K+1, 2*D*L) per-lane coefficients; channel/branch/mask encoded per lane."""
    w_out = 2 * D * L
    lanes = np.arange(w_out)
    t = lanes % L                      # position within segment
    seg = lanes // L
    j = seg % 2                        # branch (0 -> branch1, 1 -> branch2)
    c = (seg // 2) % C                 # channel (C | D => identical pattern for every packed row)
    wf = jnp.stack([w1f, w2f], axis=0)            # (2, C, K), BN scale already folded in
    sh = jnp.stack([shift1, shift2], axis=0)      # (2, C)
    rows = []
    for k in range(K):
        valid = (t + k - padding >= 0) & (t + k - padding < L)   # zero-pad & segment-boundary mask
        rows.append(jnp.where(jnp.asarray(valid), wf[j, c, k], 0.0))
    rows.append(sh[j, c])
    return jnp.stack(rows, axis=0).astype(jnp.float32)


def _forward_packed(x, w1f, w2f, shift1, shift2, *, K, padding, D, neg_slope):
    B, C, L = x.shape
    w_in = D * L
    w_out = 2 * D * L
    q = D // C                                   # batches consumed per packed row

    # Row tile sized from PADDED VMEM bytes: 2x double-buffered in/out blocks + ~4 temps.
    per_row = 4 * (2 * (_lane_pad(w_in) + w_out) + 4 * w_out)
    b1 = -(-B // q) * q
    rows_total = (b1 * C) // D
    tr = max(1, min(rows_total, _VMEM_BUDGET // per_row))
    if rows_total >= 64:                         # keep >= ~8 grid steps (pipelining + v7x 2 TCs)
        tr = min(tr, -(-rows_total // 8))
    if tr < rows_total:
        tr = max(8, (tr // 8) * 8)               # multiple of 8 sublanes
        rows_padded = -(-rows_total // tr) * tr
    else:
        tr = rows_total
        rows_padded = rows_total

    b_pad = rows_padded * q
    if b_pad > B:                                # pad batch: every grid step sees real rows
        x = jnp.pad(x, ((0, b_pad - B), (0, 0), (0, 0)))
    x_packed = x.reshape(rows_padded, w_in)      # free reshape of the contiguous (B, C, L) buffer

    params = _packed_coefficients(w1f, w2f, shift1, shift2,
                                  C=C, K=K, L=L, padding=padding, D=D)

    kernel = functools.partial(_block_packed_kernel, L=L, K=K, padding=padding,
                               D=D, neg_slope=neg_slope)
    out = pl.pallas_call(
        kernel,
        out_shape=jax.ShapeDtypeStruct((rows_padded, w_out), x.dtype),
        grid=(rows_padded // tr,),
        in_specs=[
            pl.BlockSpec((tr, w_in), lambda i: (i, 0)),
            pl.BlockSpec((K + 1, w_out), lambda i: (0, 0)),    # tiny resident coefficients
        ],
        out_specs=pl.BlockSpec((tr, w_out), lambda i: (i, 0)),
        compiler_params=pltpu.CompilerParams(
            dimension_semantics=("parallel",),
            vmem_limit_bytes=_VMEM_LIMIT_BYTES),
    )(x_packed, params)

    # Free reshape == channel_shuffle(cat([y1, y2], dim=1), group=2).
    return out.reshape(b_pad, 2 * C, L)[:B]


# ----------------------------------------------------------------------------
# General fallback: one (batch, channel) row per sublane row (any stride/padding)
# ----------------------------------------------------------------------------
def _block_rows_kernel(x_ref, p_ref, o_ref, *, K, stride, padding, neg_slope):
    x = x_ref[...].astype(jnp.float32)                 # (R, L)
    R, L = x.shape
    p = p_ref[...].astype(jnp.float32)                 # (R, 2*(K+1))
    if padding > 0:
        z = jnp.zeros((R, padding), jnp.float32)
        xp = jnp.concatenate([z, x, z], axis=-1)
    else:
        xp = x
    l_full = L + 2 * padding - K + 1
    shifted = [xp[:, k:k + l_full] for k in range(K)]  # built once, shared by both branches

    def branch(off):
        acc = jnp.zeros((R, l_full), jnp.float32)
        for k in range(K):
            acc = acc + shifted[k] * p[:, off + k:off + k + 1]
        if stride > 1:
            acc = acc[:, ::stride]
        y = acc + p[:, off + K:off + K + 1]
        return jnp.where(y >= 0.0, y, neg_slope * y)

    y1 = branch(0)
    y2 = branch(K + 1)
    l_out = y1.shape[1]
    if l_out % 128 == 0:
        # tile-aligned half writes: avoids the (R, 2*l_out) concat temporary
        o_ref[:, :l_out] = y1.astype(o_ref.dtype)
        o_ref[:, l_out:] = y2.astype(o_ref.dtype)
    else:
        o_ref[...] = jnp.concatenate([y1, y2], axis=-1).astype(o_ref.dtype)


def _forward_rows(x, w1f, w2f, shift1, shift2, *, K, stride, padding, L_out, neg_slope):
    B, C, L = x.shape
    P = 2 * (K + 1)
    per_batch = 4 * C * (2 * (_lane_pad(L) + _lane_pad(2 * L_out) + _lane_pad(P))
                         + 4 * _lane_pad(max(L + 2 * padding, 2 * L_out)))
    tb = max(1, min(B, _VMEM_BUDGET // per_batch))
    if B >= 16:                                   # several grid steps for pipelining / v7x
        tb = min(tb, -(-B // 8))
    b_pad = -(-B // tb) * tb
    if b_pad > B:
        x = jnp.pad(x, ((0, b_pad - B), (0, 0), (0, 0)))
    R = tb * C
    x_flat = x.reshape(b_pad * C, L)

    params = jnp.concatenate(
        [w1f, shift1.reshape(C, 1), w2f, shift2.reshape(C, 1)], axis=1)    # (C, P)
    # TODO(synk): this (R, P) operand lane-pads to (R, 128) in VMEM; tolerable for the
    #             large-L configs that take this path (the packed fast path avoids it).
    params_rows = jnp.tile(params, (tb, 1))                                # (R, P)

    kernel = functools.partial(_block_rows_kernel, K=K, stride=stride,
                               padding=padding, neg_slope=neg_slope)
    out_flat = pl.pallas_call(
        kernel,
        out_shape=jax.ShapeDtypeStruct((b_pad * C, 2 * L_out), x.dtype),
        grid=(b_pad // tb,),
        in_specs=[
            pl.BlockSpec((R, L), lambda i: (i, 0)),
            pl.BlockSpec((R, P), lambda i: (0, 0)),
        ],
        out_specs=pl.BlockSpec((R, 2 * L_out), lambda i: (i, 0)),
        compiler_params=pltpu.CompilerParams(
            dimension_semantics=("parallel",),
            vmem_limit_bytes=_VMEM_LIMIT_BYTES),
    )(x_flat, params_rows)

    # Free reshape == channel_shuffle(cat([y1, y2], dim=1), group=2).
    return out_flat.reshape(b_pad, 2 * C, L_out)[:B]


# ----------------------------------------------------------------------------
# Public forward
# ----------------------------------------------------------------------------
def block_forward(x, w1, w2, scale1, shift1, scale2, shift2, *,
                  kernel_size, stride, padding, neg_slope=0.01):
    """Forward pass of `Block` (eval-mode BatchNorm folded into scale/shift)."""
    B, C, L = x.shape
    K = kernel_size
    L_out = (L + 2 * padding - K) // stride + 1
    w1f = w1.reshape(C, K) * scale1.reshape(C, 1)
    w2f = w2.reshape(C, K) * scale2.reshape(C, 1)
    shift1 = shift1.reshape(C)
    shift2 = shift2.reshape(C)

    if stride == 1 and L_out == L:
        g = 64 // math.gcd(L, 64)              # min segments so 2*D*L is a multiple of 128
        D = (C * g) // math.gcd(C, g)          # lcm(C, g): same channel pattern in every packed row
        if 2 * D * L <= 1024 and D <= 32:
            return _forward_packed(x, w1f, w2f, shift1, shift2,
                                   K=K, padding=padding, D=D, neg_slope=neg_slope)
    return _forward_rows(x, w1f, w2f, shift1, shift2, K=K, stride=stride,
                         padding=padding, L_out=L_out, neg_slope=neg_slope)


def reference_forward(x, w1, w2, g1, be1, rm1, rv1, g2, be2, rm2, rv2, *,
                      kernel_size, stride, padding, eps=1e-5, neg_slope=0.01):
    """Pure-JAX reference mirroring the PyTorch module (eval-mode BN)."""
    B, C, L = x.shape

    def dwconv(xx, w):
        return jax.lax.conv_general_dilated(
            xx, w[:, None, :], window_strides=(stride,),
            padding=[(padding, padding)],
            dimension_numbers=("NCH", "OIH", "NCH"),
            feature_group_count=C)

    def branch(w, g, be, rm, rv):
        y = dwconv(x, w)
        y = ((y - rm[None, :, None]) / jnp.sqrt(rv[None, :, None] + eps)
             * g[None, :, None] + be[None, :, None])
        return jnp.where(y >= 0, y, neg_slope * y)

    out = jnp.concatenate([branch(w1, g1, be1, rm1, rv1),
                           branch(w2, g2, be2, rm2, rv2)], axis=1)
    Bq, CC, Dd = out.shape
    out = out.reshape(Bq, 2, CC // 2, Dd).transpose(0, 2, 1, 3).reshape(Bq, CC, Dd)
    return out


if __name__ == "__main__":
    # Small shapes consistent with the module: in_channel=4, kernel_size=3,
    # stride=1, padding=1, input (B=2, C=4, L=16).
    B, C, L = 2, 4, 16
    K, STRIDE, PAD = 3, 1, 1
    EPS = 1e-5

    key = jax.random.PRNGKey(0)
    ks = jax.random.split(key, 11)
    x = jax.random.normal(ks[0], (B, C, L), dtype=jnp.float32)

    w1 = 0.3 * jax.random.normal(ks[1], (C, K), dtype=jnp.float32)
    w2 = 0.3 * jax.random.normal(ks[2], (C, K), dtype=jnp.float32)
    g1 = jax.random.uniform(ks[3], (C,), minval=0.5, maxval=1.5, dtype=jnp.float32)
    be1 = 0.1 * jax.random.normal(ks[4], (C,), dtype=jnp.float32)
    rm1 = 0.1 * jax.random.normal(ks[5], (C,), dtype=jnp.float32)
    rv1 = jax.random.uniform(ks[6], (C,), minval=0.5, maxval=1.5, dtype=jnp.float32)
    g2 = jax.random.uniform(ks[7], (C,), minval=0.5, maxval=1.5, dtype=jnp.float32)
    be2 = 0.1 * jax.random.normal(ks[8], (C,), dtype=jnp.float32)
    rm2 = 0.1 * jax.random.normal(ks[9], (C,), dtype=jnp.float32)
    rv2 = jax.random.uniform(ks[10], (C,), minval=0.5, maxval=1.5, dtype=jnp.float32)

    # Fold BN (inference) into per-channel scale / shift for the kernel.
    scale1 = g1 / jnp.sqrt(rv1 + EPS)
    shift1 = be1 - rm1 * scale1
    scale2 = g2 / jnp.sqrt(rv2 + EPS)
    shift2 = be2 - rm2 * scale2

    # --- main config (module's config): exercises the lane-packed fast path ---
    out = block_forward(x, w1, w2, scale1, shift1, scale2, shift2,
                        kernel_size=K, stride=STRIDE, padding=PAD)
    out = jax.block_until_ready(out)
    ref = reference_forward(x, w1, w2, g1, be1, rm1, rv1, g2, be2, rm2, rv2,
                            kernel_size=K, stride=STRIDE, padding=PAD, eps=EPS)
    ref = jax.block_until_ready(ref)
    assert out.shape == (B, 2 * C, (L + 2 * PAD - K) // STRIDE + 1), out.shape
    np.testing.assert_allclose(np.asarray(out), np.asarray(ref), rtol=1e-5, atol=1e-5)

    # --- padding=0 config: exercises the general row-per-(b,c) fallback path ---
    out0 = block_forward(x, w1, w2, scale1, shift1, scale2, shift2,
                         kernel_size=K, stride=STRIDE, padding=0)
    out0 = jax.block_until_ready(out0)
    ref0 = reference_forward(x, w1, w2, g1, be1, rm1, rv1, g2, be2, rm2, rv2,
                             kernel_size=K, stride=STRIDE, padding=0, eps=EPS)
    ref0 = jax.block_until_ready(ref0)
    assert out0.shape == (B, 2 * C, (L - K) // STRIDE + 1), out0.shape
    np.testing.assert_allclose(np.asarray(out0), np.asarray(ref0), rtol=1e-5, atol=1e-5)

    print("KERNEL_OK")
</pallas_src>

<mosaic_0001>
module attributes {stable_mosaic.version = 11 : i64} {
  func.func @_block_packed_kernel(%arg0: i32, %arg1: memref<2x64xf32, #tpu.memory_space<vmem>>, %arg2: memref<4x128xf32, #tpu.memory_space<vmem>>, %arg3: memref<2x128xf32, #tpu.memory_space<vmem>>) attributes {dimension_semantics = [#tpu.dimension_semantics<parallel>], iteration_bounds = array<i64: 1>, scalar_prefetch = 0 : i64, scratch_operands = 0 : i64, tpu.core_type = #tpu.core_type<tc>, window_params = [{transform_indices = @transform_0, window_bounds = array<i64: 2, 64>}, {pipeline_mode = #tpu.pipeline_mode<synchronous>, transform_indices = @transform_1, window_bounds = array<i64: 4, 128>}, {transform_indices = @transform_2, window_bounds = array<i64: 2, 128>}]} {
    %c0 = arith.constant 0 : index
    %c0_0 = arith.constant 0 : index
    %0 = vector.load %arg1[%c0, %c0_0] : memref<2x64xf32, #tpu.memory_space<vmem>>, vector<2x64xf32>
    %c0_1 = arith.constant 0 : index
    %c0_2 = arith.constant 0 : index
    %1 = vector.load %arg2[%c0_1, %c0_2] : memref<4x128xf32, #tpu.memory_space<vmem>>, vector<4x128xf32>
    %2 = vector.extract_strided_slice %0 {offsets = [0, 0], sizes = [2, 16], strides = [1, 1]} : vector<2x64xf32> to vector<2x16xf32>
    %3 = vector.extract_strided_slice %0 {offsets = [0, 16], sizes = [2, 16], strides = [1, 1]} : vector<2x64xf32> to vector<2x16xf32>
    %4 = vector.extract_strided_slice %0 {offsets = [0, 32], sizes = [2, 16], strides = [1, 1]} : vector<2x64xf32> to vector<2x16xf32>
    %5 = vector.extract_strided_slice %0 {offsets = [0, 48], sizes = [2, 16], strides = [1, 1]} : vector<2x64xf32> to vector<2x16xf32>
    %6 = tpu.concatenate %2, %2, %3, %3, %4, %4, %5, %5 in 1 : vector<2x16xf32>, vector<2x16xf32>, vector<2x16xf32>, vector<2x16xf32>, vector<2x16xf32>, vector<2x16xf32>, vector<2x16xf32>, vector<2x16xf32> -> vector<2x128xf32>
    %cst = arith.constant 0.000000e+00 : f32
    %7 = vector.broadcast %cst : f32 to vector<2x1xf32>
    %cst_3 = arith.constant 0.000000e+00 : f32
    %8 = vector.broadcast %cst_3 : f32 to vector<2x1xf32>
    %9 = tpu.concatenate %7, %6, %8 in 1 : vector<2x1xf32>, vector<2x128xf32>, vector<2x1xf32> -> vector<2x130xf32>
    %cst_4 = arith.constant 0.000000e+00 : f32
    %10 = vector.broadcast %cst_4 : f32 to vector<2x128xf32>
    %11 = vector.extract_strided_slice %9 {offsets = [0, 0], sizes = [2, 128], strides = [1, 1]} : vector<2x130xf32> to vector<2x128xf32>
    %12 = vector.extract_strided_slice %1 {offsets = [0, 0], sizes = [1, 128], strides = [1, 1]} : vector<4x128xf32> to vector<1x128xf32>
    %13 = vector.broadcast %12 : vector<1x128xf32> to vector<2x128xf32>
    %14 = arith.mulf %11, %13 : vector<2x128xf32>
    %15 = arith.addf %10, %14 : vector<2x128xf32>
    %16 = vector.extract_strided_slice %9 {offsets = [0, 1], sizes = [2, 128], strides = [1, 1]} : vector<2x130xf32> to vector<2x128xf32>
    %17 = vector.extract_strided_slice %1 {offsets = [1, 0], sizes = [1, 128], strides = [1, 1]} : vector<4x128xf32> to vector<1x128xf32>
    %18 = vector.broadcast %17 : vector<1x128xf32> to vector<2x128xf32>
    %19 = arith.mulf %16, %18 : vector<2x128xf32>
    %20 = arith.addf %15, %19 : vector<2x128xf32>
    %21 = vector.extract_strided_slice %9 {offsets = [0, 2], sizes = [2, 128], strides = [1, 1]} : vector<2x130xf32> to vector<2x128xf32>
    %22 = vector.extract_strided_slice %1 {offsets = [2, 0], sizes = [1, 128], strides = [1, 1]} : vector<4x128xf32> to vector<1x128xf32>
    %23 = vector.broadcast %22 : vector<1x128xf32> to vector<2x128xf32>
    %24 = arith.mulf %21, %23 : vector<2x128xf32>
    %25 = arith.addf %20, %24 : vector<2x128xf32>
    %26 = vector.extract_strided_slice %1 {offsets = [3, 0], sizes = [1, 128], strides = [1, 1]} : vector<4x128xf32> to vector<1x128xf32>
    %27 = vector.broadcast %26 : vector<1x128xf32> to vector<2x128xf32>
    %28 = arith.addf %25, %27 : vector<2x128xf32>
    %cst_5 = arith.constant 0.000000e+00 : f32
    %29 = vector.broadcast %cst_5 : f32 to vector<2x128xf32>
    %30 = arith.cmpf oge, %28, %29 : vector<2x128xf32>
    %cst_6 = arith.constant 0.00999999977 : f32
    %31 = vector.broadcast %cst_6 : f32 to vector<2x128xf32>
    %32 = arith.mulf %31, %28 : vector<2x128xf32>
    %33 = arith.select %30, %28, %32 : vector<2x128xi1>, vector<2x128xf32>
    %c0_7 = arith.constant 0 : index
    %c0_8 = arith.constant 0 : index
    %34 = vector.load %arg3[%c0_7, %c0_8] : memref<2x128xf32, #tpu.memory_space<vmem>>, vector<2x128xf32>
    tpu.vector_store %arg3[%c0_7, %c0_8], %33 {strides = array<i32>} : memref<2x128xf32, #tpu.memory_space<vmem>>, vector<2x128xf32>,
    return
  }
  func.func @transform_0(%arg0: i32) -> (i32, i32) {
    %c0_i32 = arith.constant 0 : i32
    %c0_i32_0 = arith.constant 0 : i32
    return %arg0, %c0_i32 : i32, i32
  }
  func.func @transform_1(%arg0: i32) -> (i32, i32) {
    %c0_i32 = arith.constant 0 : i32
    %c0_i32_0 = arith.constant 0 : i32
    %c0_i32_1 = arith.constant 0 : i32
    return %c0_i32, %c0_i32_0 : i32, i32
  }
  func.func @transform_2(%arg0: i32) -> (i32, i32) {
    %c0_i32 = arith.constant 0 : i32
    %c0_i32_0 = arith.constant 0 : i32
    return %arg0, %c0_i32 : i32, i32
  }
}

</mosaic_0001>

<bundles_post_ra>
// kernel: tpu_custom_call.1
= control target key start
LH: loop header
LB: loop body
LE: loop exit
PB: predicated region body
PF: predicated region fallthrough
CT: control target
= control target key end

     0   :  { %7 = vsyncpa [#allocation3], 0  ;;  %s261_s0 = inlined_call_operand.hbm [shape: f32[2,64], index: 0, kind: input, shape index: {}]   ;;  %s262_s1 = inlined_call_operand.hbm [shape: f32[4,128], index: 1, kind: input, shape index: {}]   ;;  %s263_s2 = inlined_call_operand.hbm [shape: f32[2,128], index: 2, kind: output, shape index: {}]  }
   0x1   :  { %8 = vsyncpa [#allocation6], 0 }
   0x2   :  { %9 = vsyncpa [#allocation4], 0  ;;  %s15_s11 = sshll.u32 %s261_s0, 4  ;;  %s226_s12 = smov [#allocation2]   ;;  %s16_s11 = int_to_ptr.hbm [resolvable:$true] %s15_s11 }
   0x3   :  { %s17_s13 = sshll.u32 %s226_s12, 4  ;;  %s26_s16 = sshll.u32 %s262_s1, 4  ;;  %s18_s13 = int_to_ptr.vmem [resolvable:$true] %s17_s13  ;;  %s27_s16 = int_to_ptr.hbm [resolvable:$true] %s26_s16 }
   0x4   :  { %20 = dma.hbm_to_vmem [thread:$0]  %s16_s11, 32, %s18_s13, [#allocation3]  }
   0x5   :  { %s227_s17 = smov [#allocation5]  }
   0x6   :  { %s28_s18 = sshll.u32 %s227_s17, 4  ;;  %s29_s18 = int_to_ptr.vmem [resolvable:$true] %s28_s18 }
   0x7   :  { %31 = dma.hbm_to_vmem [thread:$0]  %s27_s16, 64, %s29_s18, [#allocation6]  }
   0x8   :  { %220 = dma.done.wait [#allocation3], 32  }
   0x9   :  { %221 = vsyncadd [#allocation3], 4294967264 }
   0xa   :  { %222 = dma.done.wait [#allocation6], 64  }
   0xb   :  { %223 = vsyncadd [#allocation6], 4294967232  ;;  %v40_v0 = vld [vmem:[#allocation2] sm:$0x3]  ;;  %s228_s0 = smov 16   ;;  %s229_s19 = smov 48  }
   0xc   :  { %43 = vrot.lane.b32.xlu0 %v40_v0, %s228_s0  ;;  %49 = vrot.lane.b32.xlu1 %v40_v0, %s229_s19  ;;  %s230_s20 = smov 32   ;;  %s231_s21 = smov 64   ;;  %v41_v1 = vld [vmem:[#allocation5] sm:$0xf]  ;;  %vm55_vm0 = vcmask 130048   ;;  %vm57_vm1 = vcmask 261120  }
   0xd   :  { %v96_v2 = vperm.slane %v41_v1, 2  ;;  %s232_s1 = smov 2   ;;  %vm59_vm2 = vcmask 392192   ;;  %vm61_vm3 = vcmask 523264   ;;  %vm63_vm4 = vcmask 654336   ;;  %s233_s22 = smov 1  }
   0xe   :  { %vm65_vm5 = vcmask 785408   ;;  %vm67_vm6 = vcmask 916480   ;;  %v79_v14 = vperm.slane %v41_v1, 1  ;;  %vm73_vm7 = vcmask 7168   ;;  %s234_s23 = smov 126   ;;  %s235_s24 = smov 127  }
   0xf   :  { %v76_v25 = vperm.slane %v41_v1, 0  ;;  %vm92_vm8 = vcmask 1039360   ;;  %vm109_vm9 = vcmask 1031168   ;;  %v113_v31 = vperm.slane %v41_v1, 3  ;;  %s236_s25 = smov [#allocation7]   ;;  %s126_s29 = sshll.u32 %s263_s2, 4  ;;  %s127_s29 = int_to_ptr.hbm [resolvable:$true] %s126_s29 }
  0x10   :  { %s124_s26 = sshll.u32 %s236_s25, 4  ;;  %s125_s26 = int_to_ptr.vmem [resolvable:$true] %s124_s26 }
  0x14   :  { %46 = vrot.lane.b32.xlu0 %v40_v0, %s230_s20  ;;  %52 = vrot.lane.b32.xlu1 %v40_v0, %s231_s21 }
  0x1c   :  { %98 = vrot.lane.b32.xlu0 %v96_v2, %s232_s1 }
  0x7e   :  { %v44_v3 = vpop.permute.xlu0 %43  ;;  %v50_v4 = vpop.permute.xlu1 %49 }
  0x7f   :  { %v56_v5 = vsel %vm55_vm0, %v40_v0, %v44_v3 }
  0x80   :  { %v58_v6 = vsel %vm57_vm1, %v56_v5, %v44_v3 }
  0x86   :  { %v47_v7 = vpop.permute.xlu0 %46  ;;  %v53_v10 = vpop.permute.xlu1 %52 }
  0x87   :  { %v60_v8 = vsel %vm59_vm2, %v58_v6, %v47_v7 }
  0x88   :  { %v62_v9 = vsel %vm61_vm3, %v60_v8, %v47_v7 }
  0x89   :  { %v64_v11 = vsel %vm63_vm4, %v62_v9, %v50_v4 }
  0x8a   :  { %v66_v12 = vsel %vm65_vm5, %v64_v11, %v50_v4 }
  0x8b   :  { %v68_v13 = vsel %vm67_vm6, %v66_v12, %v53_v10 }
  0x8c   :  { %70 = vrot.lane.b32.xlu2 %v68_v13, %s233_s22 }
  0x8e   :  { %v99_v15 = vpop.permute.xlu0 %98 }
  0x94   :  { %81 = vrot.lane.b32.xlu2 %v79_v14, %s233_s22 }
  0xe6   :  { %v71_v16 = vpop.permute.xlu2 %70 }
  0xe7   :  { %v74_v17 = vsel %vm73_vm7, 0.0, %v71_v16  ;;  %v75_v19 = vsel %vm73_vm7, %v71_v16, 0.0 }
  0xe8   :  { %v101_v18 = vmul.f32 %v99_v15, %v74_v17  ;;  %v102_v23 = vmul.f32 %v99_v15, %v75_v19  ;;  %v77_v28 = vmul.f32 %v76_v25, %v74_v17 }
  0xea   :  { %105 = vrot.lane.b32.xlu0 %v101_v18, %s234_s23 }
  0xee   :  { %v82_v20 = vpop.permute.xlu2 %81 }
  0xef   :  { %v84_v21 = vmul.f32 %v82_v20, %v74_v17  ;;  %v85_v22 = vmul.f32 %v82_v20, %v75_v19 }
  0xf1   :  { %90 = vrot.lane.b32.xlu2 %v85_v22, %s235_s24  ;;  %88 = vrot.lane.b32.xlu1 %v84_v21, %s235_s24 }
  0xf9   :  { %107 = vrot.lane.b32.xlu1 %v102_v23, %s234_s23 }
 0x14b   :  { %v91_v26 = vpop.permute.xlu2 %90 }
 0x15c   :  { %v106_v29 = vpop.permute.xlu0 %105 }
 0x163   :  { %v89_v24 = vpop.permute.xlu1 %88 }
 0x164   :  { %v93_v27 = vsel %vm92_vm8, %v89_v24, %v91_v26 }
 0x165   :  { %v95_v30 = vadd.f32 %v93_v27, %v77_v28 }
 0x16b   :  { %v108_v32 = vpop.permute.xlu1 %107 }
 0x16c   :  { %v110_v33 = vsel %vm109_vm9, %v106_v29, %v108_v32 }
 0x16d   :  { %v112_v34 = vadd.f32 %v110_v33, %v95_v30 }
 0x16f   :  { %v114_v35 = vadd.f32 %v113_v31, %v112_v34 }
 0x171   :  { %vm115_vm10 = vcmp.ge.f32.partialorder %v114_v35, 0.0  ;;  %v116_v36 = vmul.f32 0.01, %v114_v35 }
 0x173   :  { %v117_v37 = vsel %vm115_vm10, %v114_v35, %v116_v36 }
 0x174   :  { %118 = vst [vmem:[#allocation7] sm:$0x3] %v117_v37 }
 0x175   :  { %129 = dma.vmem_to_hbm [thread:$0]  %s125_s26, 32, %s127_s29, [#allocation4]  }
 0x176   :  { %224 = dma.done.wait [#allocation4], 32  }
 0x177   :  { %225 = vsyncadd [#allocation4], 4294967264 }
 0x178   :  { %134 = vsyncpa [#allocation3], 1 }
 0x179   :  { %135 = vsyncpa [#allocation6], 1 }
 0x17a   :  { %136 = vsyncpa [#allocation4], 1 }

</bundles_post_ra>
